<compile_context>
chip_gen: v6e
topology: v6e:2x2x1
jax: 0.10.0
libtpu: 0.0.40
codegen_flags: <defaults>
</compile_context>

<pallas_src>
import jax
import jax.numpy as jnp
from jax import lax
from jax.experimental import pallas as pl
from jax.experimental.pallas import tpu as pltpu


def _fused_conv_unshuffle_kernel(xm_ref, xh_ref, w_ref, o_ref):
    """2x2 stride-1 conv on space-to-depth input == 3x3 conv + PixelUnshuffle(2).

    xm_ref : (TOH, OWc, C4i)      main s2d row tile (rows [t*TOH, (t+1)*TOH))
    xh_ref : (OWc, C4i)           one-row halo (s2d row (t+1)*TOH)
    w_ref  : (2, C4i, 2*C4o)      w_ref[by] = [ w(by,bx=0) | w(by,bx=1) ]
    o_ref  : (TOH, OW, C4o)       unshuffled, channels-last output tile
    """
    TOH, OW, C4o = o_ref.shape
    OWc, C4i = xh_ref.shape

    w0 = w_ref[0]                         # (C4i, 2*C4o)
    w1 = w_ref[1]
    xm = xm_ref[...]                      # (TOH, OWc, C4i)

    def mm(x2d, w):                       # single 2-D MXU matmul, f32 accumulate
        return jnp.dot(x2d, w, preferred_element_type=jnp.float32)

    def combine(a, b):
        # a, b: (R, OWc, 2*C4o) f32 contributions of the by=0 / by=1 tap pairs.
        # left half (lanes 0:C4o)   = bx=0 tap at output column w  (input col w)
        # right half (lanes C4o:)   = bx=1 tap, lives at input col w+1 -> shift by 1.
        y = a + b
        return (y[:, 0:OW, 0:C4o] + y[:, 1:OW + 1, C4o:2 * C4o]).astype(o_ref.dtype)

    # by = 0 taps: output row r reads main-tile row r.  Flatten is free because
    # OWc % 8 == 0 (no (8,128) tile boundary crossed), so the MXU is fed the
    # whole tile with no VMEM copy.
    y0 = mm(xm.reshape(TOH * OWc, C4i), w0).reshape(TOH, OWc, 2 * C4o)

    # by = 1 taps: output row r reads main-tile row r+1; the last output row
    # reads the halo row.  Leading-dim slices of a value are free.
    y1h = mm(xh_ref[...], w1).reshape(1, OWc, 2 * C4o)

    if TOH > 1:
        y1m = mm(xm[1:TOH].reshape((TOH - 1) * OWc, C4i),
                 w1).reshape(TOH - 1, OWc, 2 * C4o)
        o_ref[0:TOH - 1] = combine(y0[0:TOH - 1], y1m)
    o_ref[TOH - 1:TOH] = combine(y0[TOH - 1:TOH], y1h)


def _fuse_weight(w_oihw):
    """(Cout, Cin, 3, 3) -> (2, 2, 4*Cin, 4*Cout): weight of the equivalent
    2x2/stride-1 conv on the space-to-depth input, with the PixelUnshuffle(2)
    channel order (c*4 + i*2 + j) baked into the output-channel axis."""
    Cout, Cin = w_oihw.shape[0], w_oihw.shape[1]
    w_hwio = jnp.transpose(w_oihw, (2, 3, 1, 0))                  # (3,3,Cin,Cout)
    w4 = jnp.zeros((4, 4, Cin, Cout, 2, 2), w_oihw.dtype)
    for i in range(2):          # output-pixel row phase
        for j in range(2):      # output-pixel col phase
            w4 = w4.at[i:i + 3, j:j + 3, :, :, i, j].set(w_hwio)
    w4 = w4.reshape(4, 4, Cin, 4 * Cout)            # out ch = c*4 + i*2 + j
    w2 = w4.reshape(2, 2, 2, 2, Cin, 4 * Cout)      # (by, u, bx, v, ci, co)
    w2 = jnp.transpose(w2, (0, 2, 1, 3, 4, 5))      # (by, bx, u, v, ci, co)
    return w2.reshape(2, 2, 4 * Cin, 4 * Cout)      # in ch = u*2Cin + v*Cin + ci


def _fuse_weight_cat(w_oihw):
    """Column-fused weight: (2, 4*Cin, 2*4*Cout) with [bx=0 | bx=1] along N."""
    w2 = _fuse_weight(w_oihw)                       # (2, 2, 4Cin, 4Cout)
    return jnp.concatenate([w2[:, 0], w2[:, 1]], axis=-1)


def _vmem_capacity_bytes():
    try:
        info = pltpu.get_tpu_info()
        for attr in ("vmem_capacity_bytes", "vmem_size_bytes", "vmem_bytes"):
            v = getattr(info, attr, None)
            if v:
                return int(v)
    except Exception:
        pass
    return 64 * 1024 * 1024          # conservative: v7x physical VMEM per TC


def _step_footprint_bytes(t, OWc, OW, C4i, C4o, itemsize):
    in_tile = t * OWc * C4i * itemsize               # main input block
    halo = OWc * C4i * itemsize                      # one-row halo block
    out_tile = t * OW * C4o * itemsize               # output block
    live_f32 = 2 * t * OWc * (2 * C4o) * 4           # ~two live f32 dot results
    # inputs/outputs are double-buffered by the pipeline; f32 live values are not.
    return 2 * (in_tile + halo + out_tile) + live_f32


def _pick_row_tile(OH, OWc, OW, C4i, C4o, itemsize, budget_bytes):
    """Largest divisor of OH whose per-step footprint fits the budget."""
    best = 1
    for t in range(1, OH + 1):
        if OH % t:
            continue
        if _step_footprint_bytes(t, OWc, OW, C4i, C4o, itemsize) <= budget_bytes:
            best = t
    return best


def downsample(x_nchw, w_oihw, *, row_tile=None):
    """Conv2d(n_feat, n_feat//2, 3, s=1, p=1, bias=False) + PixelUnshuffle(2)."""
    N, Cin, H, W = x_nchw.shape
    Cout = w_oihw.shape[0]
    assert Cout == Cin // 2 and H % 2 == 0 and W % 2 == 0
    OH, OW = H // 2, W // 2
    C4i, C4o = 4 * Cin, 4 * Cout
    OWc = ((OW + 1 + 7) // 8) * 8          # s2d column count, sublane-aligned
    dtype = x_nchw.dtype
    isz = jnp.dtype(dtype).itemsize

    # TODO(synk): this NCHW -> padded, space-to-depth channels-last prep and the
    # final transpose back to NCHW stay in XLA (one read+write each); they vanish
    # if the surrounding model keeps activations channels-last.
    x = jnp.transpose(x_nchw, (0, 2, 3, 1))                       # (N, H, W, Cin)
    pad_r = 1 + 2 * (OWc - (OW + 1))       # extra zero cols so OWc % 8 == 0
    xp = jnp.pad(x, ((0, 0), (1, 1), (1, pad_r), (0, 0)))         # (N, H+2, 2*OWc, Cin)
    xs = xp.reshape(N, OH + 1, 2, OWc, 2, Cin)
    xs = jnp.transpose(xs, (0, 1, 3, 2, 4, 5)).reshape(N, OH + 1, OWc, C4i)

    # TODO(synk): cast w_cat (and activations) to bf16 when model precision allows;
    # keeps preferred_element_type=f32 in the kernel.
    w_cat = _fuse_weight_cat(w_oihw).astype(dtype)                # (2, C4i, 2*C4o)

    # Generation-aware VMEM budgeting (v7x: 64 MiB physical; v5e/v6e: 128 MiB).
    cap = _vmem_capacity_bytes()
    w_bytes = w_cat.size * isz
    soft_limit = min(int(cap * 0.70), 100 * 1024 * 1024)
    budget = max(soft_limit - 2 * w_bytes - 4 * 1024 * 1024, 2 * 1024 * 1024)

    if row_tile is None:
        row_tile = _pick_row_tile(OH, OWc, OW, C4i, C4o, isz, budget)
        # keep >= 2 grid steps so both v7x TensorCores get work
        if N * (OH // row_tile) < 2 and row_tile % 2 == 0:
            row_tile //= 2
    if OH % row_tile != 0:                 # robustness: snap to a divisor of OH
        row_tile = next(t for t in range(min(row_tile, OH), 0, -1) if OH % t == 0)
    TOH = row_tile
    n_row_tiles = OH // TOH

    needed = _step_footprint_bytes(TOH, OWc, OW, C4i, C4o, isz) \
        + 2 * w_bytes + 4 * 1024 * 1024
    vmem_limit = int(min(cap * 0.85, max(soft_limit, needed)))

    flops = 2 * N * OH * OW * C4o * 4 * C4i           # 4 taps, K = 4*Cin each
    bytes_accessed = (xs.size + w_cat.size + N * OH * OW * C4o) * isz

    # TODO(synk): add pipeline_mode=pl.Buffered(1) on the weight spec (constant
    # index map) and Buffered(3) on the tiny halo spec once verified on the
    # target jax version; saves one weight buffer / hides the halo DMA latency.
    y = pl.pallas_call(
        _fused_conv_unshuffle_kernel,
        out_shape=jax.ShapeDtypeStruct((N, OH, OW, C4o), dtype),
        grid_spec=pltpu.PrefetchScalarGridSpec(
            num_scalar_prefetch=0,
            grid=(N, n_row_tiles),
            in_specs=[
                # main row tile: s2d rows [t*TOH, (t+1)*TOH)
                pl.BlockSpec((None, TOH, OWc, C4i), lambda n, t: (n, t, 0, 0)),
                # one-row halo: s2d row (t+1)*TOH (always exists: array has OH+1 rows)
                pl.BlockSpec((None, None, OWc, C4i),
                             lambda n, t: (n, (t + 1) * TOH, 0, 0)),
                # fused, column-concatenated 2x2 weight, shared by every grid step
                pl.BlockSpec((2, C4i, 2 * C4o), lambda n, t: (0, 0, 0)),
            ],
            out_specs=pl.BlockSpec((None, TOH, OW, C4o), lambda n, t: (n, t, 0, 0)),
        ),
        compiler_params=pltpu.CompilerParams(
            dimension_semantics=("parallel", "parallel"),
            vmem_limit_bytes=vmem_limit),
        cost_estimate=pl.CostEstimate(flops=flops, transcendentals=0,
                                      bytes_accessed=bytes_accessed),
    )(xs, xs, w_cat)

    # channels-last, already unshuffled -> NCHW to match the torch module.
    return jnp.transpose(y, (0, 3, 1, 2))


def _reference(x_nchw, w_oihw):
    conv = lax.conv_general_dilated(
        x_nchw, w_oihw, window_strides=(1, 1), padding="SAME",
        dimension_numbers=("NCHW", "OIHW", "NCHW"))
    N, C, H, W = conv.shape
    out = conv.reshape(N, C, H // 2, 2, W // 2, 2)
    out = jnp.transpose(out, (0, 1, 3, 5, 2, 4)).reshape(N, C * 4, H // 2, W // 2)
    return out


if __name__ == "__main__":
    key = jax.random.PRNGKey(0)
    k_x, k_w = jax.random.split(key)

    n_feat, N, H, W = 4, 2, 16, 16
    x = jax.random.normal(k_x, (N, n_feat, H, W), dtype=jnp.float32)
    # Conv2d weight shape (out_ch, in_ch, kH, kW) = (n_feat//2, n_feat, 3, 3)
    w = jax.random.normal(k_w, (n_feat // 2, n_feat, 3, 3), dtype=jnp.float32) * 0.1

    ref = _reference(x, w)

    out = downsample(x, w)                     # auto row tile (whole image here)
    out_tiled = downsample(x, w, row_tile=4)   # exercises the multi-tile halo path
    jax.block_until_ready((out, out_tiled))

    assert out.shape == (N, 2 * n_feat, H // 2, W // 2), out.shape
    assert jnp.allclose(out, ref, atol=1e-4, rtol=1e-4), "mismatch vs reference"
    assert jnp.allclose(out_tiled, ref, atol=1e-4, rtol=1e-4), "tiled mismatch"

    print("KERNEL_OK")
</pallas_src>

<mosaic_0001>
module attributes {stable_mosaic.version = 11 : i64} {
  func.func @_fused_conv_unshuffle_kernel(%arg0: i32, %arg1: i32, %arg2: memref<1x8x16x16xf32, #tpu.memory_space<vmem>>, %arg3: memref<1x1x16x16xf32, #tpu.memory_space<vmem>>, %arg4: memref<2x16x16xf32, #tpu.memory_space<vmem>>, %arg5: memref<1x8x8x8xf32, #tpu.memory_space<vmem>>) attributes {dimension_semantics = [#tpu.dimension_semantics<parallel>, #tpu.dimension_semantics<parallel>], iteration_bounds = array<i64: 2, 1>, scalar_prefetch = 0 : i64, scratch_operands = 0 : i64, tpu.core_type = #tpu.core_type<tc>, window_params = [{transform_indices = @transform_0, window_bounds = array<i64: 1, 8, 16, 16>}, {transform_indices = @transform_1, window_bounds = array<i64: 1, 1, 16, 16>}, {pipeline_mode = #tpu.pipeline_mode<synchronous>, transform_indices = @transform_2, window_bounds = array<i64: 2, 16, 16>}, {transform_indices = @transform_3, window_bounds = array<i64: 1, 8, 8, 8>}]} {
    %c0 = arith.constant 0 : index
    %c0_0 = arith.constant 0 : index
    %c0_1 = arith.constant 0 : index
    %0 = vector.load %arg4[%c0, %c0_0, %c0_1] : memref<2x16x16xf32, #tpu.memory_space<vmem>>, vector<1x16x16xf32>
    %1 = vector.shape_cast %0 : vector<1x16x16xf32> to vector<16x16xf32>
    %c1 = arith.constant 1 : index
    %c0_2 = arith.constant 0 : index
    %c0_3 = arith.constant 0 : index
    %2 = vector.load %arg4[%c1, %c0_2, %c0_3] : memref<2x16x16xf32, #tpu.memory_space<vmem>>, vector<1x16x16xf32>
    %3 = vector.shape_cast %2 : vector<1x16x16xf32> to vector<16x16xf32>
    %c0_4 = arith.constant 0 : index
    %c0_5 = arith.constant 0 : index
    %c0_6 = arith.constant 0 : index
    %c0_7 = arith.constant 0 : index
    %4 = vector.load %arg2[%c0_4, %c0_5, %c0_6, %c0_7] : memref<1x8x16x16xf32, #tpu.memory_space<vmem>>, vector<1x8x16x16xf32>
    %5 = vector.shape_cast %4 : vector<1x8x16x16xf32> to vector<8x16x16xf32>
    %6 = vector.shape_cast %5 : vector<8x16x16xf32> to vector<128x16xf32>
    %cst = arith.constant dense<0.000000e+00> : vector<128x16xf32>
    %7 = tpu.matmul %6, %1, %cst {dimension_numbers = #tpu.dot_dimension_numbers<[1], [0], [0], [1], [0, 0, 1, 1], [], []>} : vector<128x16xf32>, vector<16x16xf32>, vector<128x16xf32> -> vector<128x16xf32>
    %8 = vector.shape_cast %7 : vector<128x16xf32> to vector<8x16x16xf32>
    %c0_8 = arith.constant 0 : index
    %c0_9 = arith.constant 0 : index
    %c0_10 = arith.constant 0 : index
    %c0_11 = arith.constant 0 : index
    %9 = vector.load %arg3[%c0_8, %c0_9, %c0_10, %c0_11] : memref<1x1x16x16xf32, #tpu.memory_space<vmem>>, vector<1x1x16x16xf32>
    %10 = vector.shape_cast %9 : vector<1x1x16x16xf32> to vector<16x16xf32>
    %cst_12 = arith.constant dense<0.000000e+00> : vector<16x16xf32>
    %11 = tpu.matmul %10, %3, %cst_12 {dimension_numbers = #tpu.dot_dimension_numbers<[1], [0], [0], [1], [0, 0, 1, 1], [], []>} : vector<16x16xf32>, vector<16x16xf32>, vector<16x16xf32> -> vector<16x16xf32>
    %12 = vector.shape_cast %11 : vector<16x16xf32> to vector<1x16x16xf32>
    %13 = vector.extract_strided_slice %5 {offsets = [1, 0, 0], sizes = [7, 16, 16], strides = [1, 1, 1]} : vector<8x16x16xf32> to vector<7x16x16xf32>
    %14 = vector.shape_cast %13 : vector<7x16x16xf32> to vector<112x16xf32>
    %cst_13 = arith.constant dense<0.000000e+00> : vector<112x16xf32>
    %15 = tpu.matmul %14, %3, %cst_13 {dimension_numbers = #tpu.dot_dimension_numbers<[1], [0], [0], [1], [0, 0, 1, 1], [], []>} : vector<112x16xf32>, vector<16x16xf32>, vector<112x16xf32> -> vector<112x16xf32>
    %16 = vector.shape_cast %15 : vector<112x16xf32> to vector<7x16x16xf32>
    %17 = vector.extract_strided_slice %8 {offsets = [0, 0, 0], sizes = [7, 16, 16], strides = [1, 1, 1]} : vector<8x16x16xf32> to vector<7x16x16xf32>
    %18 = arith.addf %17, %16 : vector<7x16x16xf32>
    %19 = vector.extract_strided_slice %18 {offsets = [0, 0, 0], sizes = [7, 8, 8], strides = [1, 1, 1]} : vector<7x16x16xf32> to vector<7x8x8xf32>
    %20 = vector.extract_strided_slice %18 {offsets = [0, 1, 8], sizes = [7, 8, 8], strides = [1, 1, 1]} : vector<7x16x16xf32> to vector<7x8x8xf32>
    %21 = arith.addf %19, %20 : vector<7x8x8xf32>
    %c0_14 = arith.constant 0 : index
    %c0_15 = arith.constant 0 : index
    %c0_16 = arith.constant 0 : index
    %c0_17 = arith.constant 0 : index
    %22 = vector.load %arg5[%c0_14, %c0_15, %c0_16, %c0_17] : memref<1x8x8x8xf32, #tpu.memory_space<vmem>>, vector<1x7x8x8xf32>
    %23 = vector.shape_cast %22 : vector<1x7x8x8xf32> to vector<7x8x8xf32>
    %24 = vector.shape_cast %21 : vector<7x8x8xf32> to vector<1x7x8x8xf32>
    tpu.vector_store %arg5[%c0_14, %c0_15, %c0_16, %c0_17], %24 {strides = array<i32>} : memref<1x8x8x8xf32, #tpu.memory_space<vmem>>, vector<1x7x8x8xf32>,
    %25 = vector.extract_strided_slice %8 {offsets = [7, 0, 0], sizes = [1, 16, 16], strides = [1, 1, 1]} : vector<8x16x16xf32> to vector<1x16x16xf32>
    %26 = arith.addf %25, %12 : vector<1x16x16xf32>
    %27 = vector.extract_strided_slice %26 {offsets = [0, 0, 0], sizes = [1, 8, 8], strides = [1, 1, 1]} : vector<1x16x16xf32> to vector<1x8x8xf32>
    %28 = vector.extract_strided_slice %26 {offsets = [0, 1, 8], sizes = [1, 8, 8], strides = [1, 1, 1]} : vector<1x16x16xf32> to vector<1x8x8xf32>
    %29 = arith.addf %27, %28 : vector<1x8x8xf32>
    %c0_18 = arith.constant 0 : index
    %c7 = arith.constant 7 : index
    %c0_19 = arith.constant 0 : index
    %c0_20 = arith.constant 0 : index
    %30 = vector.load %arg5[%c0_18, %c7, %c0_19, %c0_20] : memref<1x8x8x8xf32, #tpu.memory_space<vmem>>, vector<1x1x8x8xf32>
    %31 = vector.shape_cast %30 : vector<1x1x8x8xf32> to vector<1x8x8xf32>
    %32 = vector.shape_cast %29 : vector<1x8x8xf32> to vector<1x1x8x8xf32>
    tpu.vector_store %arg5[%c0_18, %c7, %c0_19, %c0_20], %32 {strides = array<i32>} : memref<1x8x8x8xf32, #tpu.memory_space<vmem>>, vector<1x1x8x8xf32>,
    return
  }
  func.func @transform_0(%arg0: i32, %arg1: i32) -> (i32, i32, i32, i32) {
    %c0_i32 = arith.constant 0 : i32
    %c0_i32_0 = arith.constant 0 : i32
    %c0_i32_1 = arith.constant 0 : i32
    return %arg0, %arg1, %c0_i32, %c0_i32_0 : i32, i32, i32, i32
  }
  func.func @transform_1(%arg0: i32, %arg1: i32) -> (i32, i32, i32, i32) {
    %c1_i32 = arith.constant 1 : i32
    %0 = arith.addi %arg1, %c1_i32 : i32
    %c8_i32 = arith.constant 8 : i32
    %1 = arith.muli %0, %c8_i32 : i32
    %c0_i32 = arith.constant 0 : i32
    %c0_i32_0 = arith.constant 0 : i32
    %c0_i32_1 = arith.constant 0 : i32
    return %arg0, %1, %c0_i32, %c0_i32_0 : i32, i32, i32, i32
  }
  func.func @transform_2(%arg0: i32, %arg1: i32) -> (i32, i32, i32) {
    %c0_i32 = arith.constant 0 : i32
    %c0_i32_0 = arith.constant 0 : i32
    %c0_i32_1 = arith.constant 0 : i32
    %c0_i32_2 = arith.constant 0 : i32
    return %c0_i32, %c0_i32_0, %c0_i32_1 : i32, i32, i32
  }
  func.func @transform_3(%arg0: i32, %arg1: i32) -> (i32, i32, i32, i32) {
    %c0_i32 = arith.constant 0 : i32
    %c0_i32_0 = arith.constant 0 : i32
    %c0_i32_1 = arith.constant 0 : i32
    return %arg0, %arg1, %c0_i32, %c0_i32_0 : i32, i32, i32, i32
  }
}

</mosaic_0001>

<bundles_post_ra>
// kernel: tpu_custom_call.1
= control target key start
LH: loop header
LB: loop body
LE: loop exit
PB: predicated region body
PF: predicated region fallthrough
CT: control target
= control target key end

     0   :  { %s1693_s0 = inlined_call_operand.hbm [shape: f32[2,9,16,16], index: 0, kind: input, shape index: {}]   ;;  %s1694_s1 = inlined_call_operand.hbm [shape: f32[2,9,16,16], index: 1, kind: input, shape index: {}]   ;;  %s1695_s2 = inlined_call_operand.hbm [shape: f32[2,16,16], index: 2, kind: input, shape index: {}]   ;;  %s1696_s3 = inlined_call_operand.hbm [shape: f32[2,8,8,8], index: 3, kind: output, shape index: {}]  }
   0x1   :  { %1702 = sst [smem:[#allocation17_spill]] %s1693_s0 }
   0x2   :  { %1703 = sst [smem:[#allocation18_spill]] %s1695_s2 }
   0x3   :  { %8 = vsyncpa [#allocation3], 0 }
   0x4   :  { %10 = vsyncpa [#allocation3 + $0x1], 0 }
   0x5   :  { %11 = vsyncpa [#allocation6], 0 }
   0x6   :  { %13 = vsyncpa [#allocation6 + $0x1], 0 }
   0x7   :  { %14 = vsyncpa [#allocation4], 0 }
   0x8   :  { %16 = vsyncpa [#allocation4 + $0x1], 0  ;;  %s1397_s12 = smov 0   ;;  %s1399_s13 = smov 0  }
   0x9   :  { %s1401_s14 = smov 0   ;;  %s1403_s15 = smov 0  }
   0xa   :  { %s1405_s16 = smov 0   ;;  %s1407_s17 = smov 0  }
   0xb LB: > { %1704 = sst [smem:[#allocation13_spill]] %s1354_s14  ;;  %s1428_s18 = sadd.s32 4294967295, %s1366_s17   ;;  %s1366_s17 = sphi %s1407_s17, %s22_s17   ;;  %s1362_s16 = sphi %s1405_s16, %s1722_s16   ;;  %s1358_s15 = sphi %s1403_s15, %s1721_s15   ;;  %s1354_s14 = sphi %s1401_s14, %s1720_s14   ;;  %s1350_s13 = sphi %s1399_s13, %s1724_s13   ;;  %s1346_s12 = sphi %s1397_s12, %s1723_s12  }
   0xc   : > { %1705 = sst [smem:[#allocation14_spill]] %s1362_s16  ;;  %s961_s19 = sadd.s32 4294967294, %s1366_s17  }
   0xd   : > { %p56_p0 = scmp.ne.s32.totalorder %s1350_s13, %s1346_s12  ;;  %p57_p1 = scmp.eq.s32.totalorder %s1428_s18, 0 }
   0xe   : > { %p141_p3 = scmp.eq.s32.totalorder %s961_s19, 1  ;;  %p962_p5 = scmp.ge.s32.totalorder %s1366_s17, 1 }
   0xf   : > { %p1437_p4 = por %p57_p1, %p56_p0  ;;  %p148_p7 = scmp.lt.s32.totalorder %s1366_s17, 3 }
  0x10   : > { %p1442_p6 = por %p141_p3, %p56_p0  ;;  %s1368_s23 = smov [#allocation7]  }
  0x11   : > { %p1447_p8 = pnand %p962_p5, %p148_p7  ;;  %s160_s24 = sshll.u32 %s1368_s23, 4  ;;  %s161_s24 = int_to_ptr.vmem [resolvable:$true] %s160_s24 }
  0x12   : > { %s1707_s21 = scalar_select %p1442_p6, 1, 0 }
  0x13   : > { %p1122_p9 = pneg %p1447_p8  ;;  %p964_p10 = scmp.ge.s32.totalorder %s1366_s17, 2 }
  0x14   : > { %s34_s26 = sadd.s32 1, %s1362_s16  ;;  %s1206_s27 = scalar_lea.vmem %s161_s24, 512 }
  0x15   : > { %p1456_p11 = pnand %p1122_p9, %p57_p1  ;;  %p1207_p13 = scmp.ne.s32.totalorder %s161_s24, %s1206_s27 }
  0x16   : > { %p1214_p5 = scmp.lt.s32.totalorder %s161_s24, %s161_s24  ;;  %p1215_p7 = scmp.lt.s32.totalorder %s1206_s27, %s1206_s27 }
  0x17   : > { %p1197_p12 = pneg %p1456_p11 }
  0x18   : > { %p1216_p2 = por %p1215_p7, %p1214_p5 }
  0x19   : > { %p1209_p0 = pnand %p1207_p13, %p1197_p12 }
  0x1b   : > { %p1210_p3 = pneg %p1209_p0 }
  0x1d   : > { %p1217_p6 = pnand %p1216_p2, %p1210_p3 }
  0x1f   : > { %1220 = shalt.err (!%p1217_p6)
}
  0x20   : > { %s1697_s28 = smov 128   ;;  %s1370_s29 = smov 8  }
  0x21   : > { %s1710_s2 = sld [smem:[#allocation18_spill]]  ;;  %p36_p2 = scmp.ge.s32.totalorder %s34_s26, 2 }
  0x22   : > { %s43_s5 = sadd.s32 1, %s1354_s14  ;;  %p50_p6 = scmp.ne.s32.totalorder %s1354_s14, %s1350_s13 }
  0x23   : > { %p51_p9 = scmp.eq.s32.totalorder %s1366_s17, 0  ;;  %s1726_s26 = smov (%p36_p2, %s34_s26), 0 }
  0x24   : > { %1711 = sst [smem:[#allocation15_spill]] %s1726_s26  ;;  %p1712_p13 = scmp.eq.s32.totalorder %s1428_s18, 1 }
  0x25   : > { %p52_p12 = por %p51_p9, %p50_p6  ;;  %s38_s7 = ssub.s32 %s1362_s16, %s1726_s26 }
  0x26   : > { %p1479_p0 = por %p1712_p13, %p50_p6  ;;  %p1138_p3 = scmp.lt.s32.totalorder %s1366_s17, 2 }
  0x27   : > { %1125 = dma.hbm_to_vmem [thread:$0]  (!%p1456_p11), %s1710_s2, 512, %s161_s24, [#allocation6], %s1697_s28, %s1697_s28, %s1370_s29  }
  0x28   : > { %p41_p5 = scmp.eq.s32.totalorder %s38_s7, 0  ;;  %s1487_s8 = sand.u32 1, %s1354_s14  }
  0x29   : > { %s965_s9 = sshll.u32 %s1487_s8, 7  ;;  %s1111_s11 = smul.u32 2304, %s1362_s16 }
  0x2a   : > { %s1491_s10 = scalar_select %p41_p5, %s1354_s14, %s43_s5  }
  0x2b   : > { %s178_s19 = scalar_lea.vmem [#allocation2], %s965_s9  ;;  %p1494_p11 = pnand %p1138_p3, %p52_p12 }
  0x2c   : > { %1714 = sst [smem:[#allocation16_spill]] %s1491_s10  ;;  %s196_s23 = sshll.u32 %s178_s19, 4  ;;  %s197_s23 = int_to_ptr.vmem [resolvable:$true] %s196_s23 }
  0x2d   : > { %s1716_s0 = sld [smem:[#allocation17_spill]]  ;;  %s206_s4 = sand.u32 1, %s1366_s17  }
  0x2e   : > { %s175_s7 = scalar_lea.sflag [#allocation3], %s1487_s8  ;;  %p1223_p7 = pneg %p1494_p11 }
  0x2f   : > { %s1234_s5 = scalar_lea.vmem %s197_s23, 2048  ;;  %s1371_s9 = smov [#allocation2]  }
  0x30   : > { %p1235_p2 = scmp.ne.s32.totalorder %s197_s23, %s1234_s5  ;;  %s1239_s19 = sshll.u32 %s1371_s9, 4  ;;  %s1240_s19 = int_to_ptr.vmem [resolvable:$false] %s1239_s19 }
  0x31   : > { %s1241_s28 = scalar_lea.vmem %s1240_s19, 4096  ;;  %p1242_p12 = scmp.lt.s32.totalorder %s197_s23, %s1240_s19 }
  0x32   : > { %p1237_p6 = pnand %p1235_p2, %p1223_p7  ;;  %p1243_p13 = scmp.lt.s32.totalorder %s1241_s28, %s1234_s5 }
  0x33   : > { %s193_s30 = scalar_lea.hbm %s1716_s0, %s1111_s11 }
  0x34   : > { %p1238_p9 = pneg %p1237_p6  ;;  %p1244_p3 = por %p1243_p13, %p1242_p12 }
  0x36   : > { %p1245_p5 = pnand %p1244_p3, %p1238_p9 }
  0x38   : > { %1248 = shalt.err (!%p1245_p5)
}
  0x39   : > { %s1717_s25 = smov 128   ;;  %s967_s27 = sshll.u32 %s1487_s8, 4 }
  0x3a   : > { %1129 = dma.hbm_to_vmem [thread:$0]  (!%p1494_p11), %s193_s30, 2048, %s197_s23, %s175_s7, %s1717_s25, %s1717_s25, %s1370_s29  }
  0x3b   : > { %s882_s9 = scalar_lea.hbm %s1694_s1, %s1111_s11  ;;  %s210_s16 = scalar_lea.vmem [#allocation5], %s967_s27 }
  0x3c   : > { %s883_s26 = scalar_lea.hbm %s882_s9, 2048  ;;  %s221_s19 = sshll.u32 %s210_s16, 4  ;;  %s222_s19 = int_to_ptr.vmem [resolvable:$true] %s221_s19 }
  0x3d   : > { %s207_s28 = scalar_lea.sflag [#allocation6], %s206_s4  ;;  %s1262_s5 = scalar_lea.vmem %s222_s19, 256 }
  0x3e   : > { %p1263_p2 = scmp.ne.s32.totalorder %s222_s19, %s1262_s5  ;;  %s1372_s10 = smov [#allocation5]  }
  0x3f   : > { %s1267_s14 = sshll.u32 %s1372_s10, 4  ;;  %s1268_s14 = int_to_ptr.vmem [resolvable:$false] %s1267_s14 }
  0x40   : > { %p1265_p6 = pnand %p1263_p2, %p1223_p7  ;;  %s1269_s23 = scalar_lea.vmem %s1268_s14, 512 }
  0x41   : > { %p1270_p12 = scmp.lt.s32.totalorder %s222_s19, %s1268_s14  ;;  %p1271_p13 = scmp.lt.s32.totalorder %s1269_s23, %s1262_s5 }
  0x42   : > { %p1266_p9 = pneg %p1265_p6 }
  0x43   : > { %p1272_p3 = por %p1271_p13, %p1270_p12 }
  0x45   : > { %p1273_p5 = pnand %p1272_p3, %p1266_p9 }
  0x47   : > { %1276 = shalt.err (!%p1273_p5)
}
  0x48   : > { %1132 = dma.hbm_to_vmem [thread:$0]  (!%p1494_p11), %s883_s26, 256, %s222_s19, %s207_s28, %s1717_s25, %s1717_s25, %s1370_s29  }
  0x49   : > { %233 = sbr.rel (%p1447_p8) target bundleno = 450 (0x1c2), region = 32  ;;  %s1528_s0 = sand.u32 (!%p1447_p8), 1, %s1350_s13  }
  0x4a   : > { %s970_s2 = sshll.u32 (!%p1447_p8), %s1528_s0, 7  ;;  %s236_s14 = scalar_lea.sflag (!%p1447_p8), [#allocation3], %s1528_s0 }
  0x4b   : > { %s1532_s16 = scalar_lea.vmem (!%p1447_p8), [#allocation2], %s970_s2 }
  0x4e   : > { %1329 = dma.done.wait (%p1437_p4), %s236_s14, 2048  }
  0x4f   : > { %1331 = vsyncadd (%p1437_p4), %s236_s14, 4294965248  ;;  %s244_s22 = sand.u32 1, %s1428_s18   ;;  %s971_s26 = sshll.u32 %s1528_s0, 4 }
  0x50   : > { %s245_s29 = scalar_lea.sflag [#allocation6], %s244_s22  ;;  %s248_s8 = scalar_lea.vmem [#allocation5], %s971_s26 }
  0x51   : > { %1333 = dma.done.wait (%p1437_p4), %s245_s29, 256  }
  0x52   : > { %1335 = vsyncadd (%p1437_p4), %s245_s29, 4294967040 }
  0x53   : > { %1337 = dma.done.wait (%p57_p1), [#allocation6], 512  }
  0x54   : > { %1339 = vsyncadd (%p57_p1), [#allocation6], 4294966784  ;;  %v290_v0 = vld [vmem:[#allocation7 + $0x8] sm:$0xff]  ;;  %v293_v1 = vld [vmem:[#allocation7 + $0x18] sm:$0xff]  ;;  %vm310_vm0 = vcmask 130048   ;;  %vm750_vm1 = vcmask 1046528  }
  0x55   : > { %v289_v2 = vld [vmem:[#allocation7] sm:$0xff]  ;;  %1051 = vmatprep.subr.mxu0 %v290_v0  ;;  %1079 = vmatprep.subr.mxu1 %v293_v1  ;;  %v292_v3 = vld [vmem:[#allocation7 + $0x10] sm:$0xff]  ;;  %v295_v6 = vld [vmem:[%s1532_s16 + $0x8] sm:$0xff]  ;;  %s1373_s18 = smov 120   ;;  %s973_s20 = sshll.u32 %s1528_s0, 6  ;;  %vm800_vm2 = vcmask 64512  }
  0x56   : > { %v294_v4 = vld [vmem:[%s1532_s16] sm:$0xff]  ;;  %1052 = vmatpush3.msra.mxu0 %v290_v0  ;;  %1080 = vmatpush3.msra.mxu1 %v293_v1  ;;  %v505_v7 = vld [vmem:[%s248_s8 + $0x8] sm:$0xff]  ;;  %v296_v8 = vld [vmem:[%s1532_s16 + $0x10] sm:$0xff]  ;;  %s279_s10 = scalar_lea.vmem [#allocation8], %s973_s20  ;;  %s1012_s11 = sshll.u32 %s1358_s15, 10 }
  0x57   : > { %v504_v5 = vld [vmem:[%s248_s8] sm:$0xff]  ;;  %1053 = vmatprep.subr.mxu0 %v289_v2  ;;  %1081 = vmatprep.subr.mxu1 %v292_v3  ;;  %v297_v9 = vld [vmem:[%s1532_s16 + $0x18] sm:$0xff]  ;;  %v299_v11 = vld [vmem:[%s1532_s16 + $0x28] sm:$0xff]  ;;  %s837_s24 = sshll.u32 %s279_s10, 4  ;;  %s1641_s7 = scalar_lea.hbm %s1696_s3, %s1012_s11  ;;  %s1643_s24 = int_to_ptr.vmem [resolvable:$true] %s837_s24 }
  0x58   : > { %1054 = vmatpush3.msra.mxu0 %v289_v2  ;;  %1055 = vmatprep.mubr.msk.f32.mxu0 %vm310_vm0, %v294_v4  ;;  %v298_v10 = vld [vmem:[%s1532_s16 + $0x20] sm:$0xff]  ;;  %v300_v12 = vld [vmem:[%s1532_s16 + $0x30] sm:$0xff]  ;;  %v301_v13 = vld [vmem:[%s1532_s16 + $0x38] sm:$0xff]  ;;  %s822_s15 = scalar_lea.sflag [#allocation4], %s1528_s0  ;;  %s1278_s25 = scalar_lea.vmem %s1643_s24, 1024 }
  0x59   : > { %1082 = vmatpush3.msra.mxu1 %v292_v3  ;;  %1083 = vmatprep.mubr.msk.f32.mxu1 %vm310_vm0, %v504_v5  ;;  %v302_v14 = vld [vmem:[%s1532_s16 + $0x40] sm:$0xff]  ;;  %v303_v15 = vld [vmem:[%s1532_s16 + $0x48] sm:$0xff]  ;;  %v304_v16 = vld [vmem:[%s1532_s16 + $0x50] sm:$0xff]  ;;  %p1279_p1 = scmp.ne.s32.totalorder %s1643_s24, %s1278_s25  ;;  %s1374_s27 = smov [#allocation8]  }
  0x5a   : > { %1056 = vmatmul.mubr.msk.f32.vlgmr.msra.gmra.mxu0 %vm310_vm0, %v295_v6  ;;  %1084 = vmatmul.mubr.msk.f32.vlgmr.msra.gmra.mxu1 %vm310_vm0, %v505_v7  ;;  %v305_v17 = vld [vmem:[%s1532_s16 + $0x58] sm:$0xff]  ;;  %v306_v18 = vld [vmem:[%s1532_s16 + $0x60] sm:$0xff]  ;;  %v307_v19 = vld [vmem:[%s1532_s16 + $0x68] sm:$0xff]  ;;  %s1282_s9 = sshll.u32 %s1374_s27, 4  ;;  %s1283_s9 = int_to_ptr.vmem [resolvable:$false] %s1282_s9 }
  0x5b   : > { %1086 = vmatprep.subr.mxu1 %v293_v1  ;;  %1058 = vmatprep.mubr.msk.f32.mxu0 %vm310_vm0, %v296_v8  ;;  %v308_v20 = vld [vmem:[%s1532_s16 + $0x70] sm:$0xff]  ;;  %v309_v21 = vld [vmem:[%s1532_s16 + $0x78] sm:$0xff]  ;;  %p1280_p4 = pnand %p1279_p1, %p1479_p0  ;;  %s1284_s19 = scalar_lea.vmem %s1283_s9, 2048 }
  0x5c   : > { %1087 = vmatpush3.msra.mxu1 %v293_v1  ;;  %1090 = vmatprep.mubr.msk.f32.mxu1 %vm310_vm0, %v296_v8  ;;  %p1285_p11 = scmp.lt.s32.totalorder %s1643_s24, %s1283_s9  ;;  %p1286_p7 = scmp.lt.s32.totalorder %s1284_s19, %s1278_s25 }
  0x5d   : > { %1088 = vmatprep.subr.mxu1 %v292_v3  ;;  %p1281_p8 = pneg %p1280_p4 }
  0x5e   : > { %1089 = vmatpush3.msra.mxu1 %v292_v3  ;;  %1059 = vmatmul.mubr.msk.f32.gmra.mxu0 %vm310_vm0, %v297_v9  ;;  %p1287_p2 = por %p1286_p7, %p1285_p11 }
  0x5f   : > { %1091 = vmatmul.mubr.msk.f32.vlgmr.msra.gmra.mxu1 %vm310_vm0, %v297_v9  ;;  %1061 = vmatprep.mubr.msk.f32.mxu0 %vm310_vm0, %v298_v10 }
  0x60   : > { %1093 = vmatprep.mubr.msk.f32.mxu1 %vm310_vm0, %v298_v10  ;;  %p1288_p6 = pnand %p1287_p2, %p1281_p8 }
  0x62   : > { %1062 = vmatmul.mubr.msk.f32.gmra.mxu0 %vm310_vm0, %v299_v11 }
  0x63   : > { %1094 = vmatmul.mubr.msk.f32.gmra.mxu1 %vm310_vm0, %v299_v11  ;;  %1064 = vmatprep.mubr.msk.f32.mxu0 %vm310_vm0, %v300_v12 }
  0x64   : > { %1096 = vmatprep.mubr.msk.f32.mxu1 %vm310_vm0, %v300_v12 }
  0x66   : > { %1065 = vmatmul.mubr.msk.f32.gmra.mxu0 %vm310_vm0, %v301_v13 }
  0x67   : > { %1097 = vmatmul.mubr.msk.f32.gmra.mxu1 %vm310_vm0, %v301_v13  ;;  %1067 = vmatprep.mubr.msk.f32.mxu0 %vm310_vm0, %v302_v14 }
  0x68   : > { %1099 = vmatprep.mubr.msk.f32.mxu1 %vm310_vm0, %v302_v14 }
  0x6a   : > { %1068 = vmatmul.mubr.msk.f32.gmra.mxu0 %vm310_vm0, %v303_v15 }
  0x6b   : > { %1100 = vmatmul.mubr.msk.f32.gmra.mxu1 %vm310_vm0, %v303_v15  ;;  %1070 = vmatprep.mubr.msk.f32.mxu0 %vm310_vm0, %v304_v16 }
  0x6c   : > { %1102 = vmatprep.mubr.msk.f32.mxu1 %vm310_vm0, %v304_v16 }
  0x6e   : > { %1071 = vmatmul.mubr.msk.f32.gmra.mxu0 %vm310_vm0, %v305_v17 }
  0x6f   : > { %1103 = vmatmul.mubr.msk.f32.gmra.mxu1 %vm310_vm0, %v305_v17  ;;  %1073 = vmatprep.mubr.msk.f32.mxu0 %vm310_vm0, %v306_v18 }
  0x70   : > { %1105 = vmatprep.mubr.msk.f32.mxu1 %vm310_vm0, %v306_v18 }
  0x72   : > { %1074 = vmatmul.mubr.msk.f32.gmra.mxu0 %vm310_vm0, %v307_v19 }
  0x73   : > { %1106 = vmatmul.mubr.msk.f32.gmra.mxu1 %vm310_vm0, %v307_v19  ;;  %1076 = vmatprep.mubr.msk.f32.mxu0 %vm310_vm0, %v308_v20 }
  0x74   : > { %1108 = vmatprep.mubr.msk.f32.mxu1 %vm310_vm0, %v308_v20 }
  0x76   : > { %1077 = vmatmul.mubr.msk.f32.gmra.mxu0 %vm310_vm0, %v309_v21 }
  0x77   : > { %1109 = vmatmul.mubr.msk.f32.gmra.mxu1 %vm310_vm0, %v309_v21 }
 0x11a   : > { %v1057_v22 = vpop.f32.mrf.mxu0  ;;  %v1596_v23 = vpop.f32.mrf.mxu1 }
 0x11c   : > { %v425_v24 = vpop.f32.mrf.mxu0  ;;  %v1598_v25 = vpop.f32.mrf.mxu1 }
 0x11e   : > { %v1060_v26 = vpop.f32.mrf.mxu0 }
 0x11f   : > { %v1092_v27 = vpop.f32.mrf.mxu1 }
 0x120   : > { %v723_v28 = vadd.f32 %v1092_v27, %v1057_v22  ;;  %v435_v29 = vpop.f32.mrf.mxu0 }
 0x121   : > { %v653_v30 = vpop.f32.mrf.mxu1 }
 0x122   : > { %v1600_v31 = vadd.f32 %v653_v30, %v425_v24  ;;  %v1063_v32 = vpop.f32.mrf.mxu0  ;;  %v752_v34 = vrot.slane %v723_v28, 1 }
 0x123   : > { %v1095_v33 = vpop.f32.mrf.mxu1 }
 0x124   : > { %v751_v35 = vrot.slane %v1600_v31, 1  ;;  %v725_v36 = vadd.f32 %v1095_v33, %v1060_v26  ;;  %v445_v37 = vpop.f32.mrf.mxu0 }
 0x125   : > { %v663_v38 = vpop.f32.mrf.mxu1 }
 0x126   : > { %v1603_v39 = vadd.f32 %v663_v38, %v435_v29  ;;  %v753_v40 = vsel %vm750_vm1, %v751_v35, %v752_v34  ;;  %v1066_v41 = vpop.f32.mrf.mxu0  ;;  %v755_v43 = vrot.slane %v725_v36, 1 }
 0x127   : > { %v1098_v42 = vpop.f32.mrf.mxu1  ;;  %772 = vrot.lane.b32.xlu0 %v753_v40, %s1373_s18 }
 0x128   : > { %v754_v44 = vrot.slane %v1603_v39, 1  ;;  %v727_v45 = vadd.f32 %v1098_v42, %v1063_v32  ;;  %v455_v46 = vpop.f32.mrf.mxu0 }
 0x129   : > { %v673_v47 = vpop.f32.mrf.mxu1 }
 0x12a   : > { %v1608_v48 = vadd.f32 %v673_v47, %v445_v37  ;;  %v756_v49 = vsel %vm750_vm1, %v754_v44, %v755_v43  ;;  %v1069_v50 = vpop.f32.mrf.mxu0  ;;  %v758_v52 = vrot.slane %v727_v45, 1 }
 0x12b   : > { %v1101_v51 = vpop.f32.mrf.mxu1  ;;  %774 = vrot.lane.b32.xlu0 %v756_v49, %s1373_s18 }
 0x12c   : > { %v757_v53 = vrot.slane %v1608_v48, 1  ;;  %v729_v54 = vadd.f32 %v1101_v51, %v1066_v41  ;;  %v465_v55 = vpop.f32.mrf.mxu0 }
 0x12d   : > { %v683_v56 = vpop.f32.mrf.mxu1 }
 0x12e   : > { %v728_v57 = vadd.f32 %v683_v56, %v455_v46  ;;  %v759_v58 = vsel %vm750_vm1, %v757_v53, %v758_v52  ;;  %v1072_v59 = vpop.f32.mrf.mxu0  ;;  %v761_v61 = vrot.slane %v729_v54, 1 }
 0x12f   : > { %v1104_v60 = vpop.f32.mrf.mxu1  ;;  %776 = vrot.lane.b32.xlu1 %v759_v58, %s1373_s18 }
 0x130   : > { %v760_v62 = vrot.slane %v728_v57, 1  ;;  %v731_v63 = vadd.f32 %v1104_v60, %v1069_v50  ;;  %v475_v0 = vpop.f32.mrf.mxu0 }
 0x131   : > { %v693_v1 = vpop.f32.mrf.mxu1 }
 0x132   : > { %v730_v2 = vadd.f32 %v693_v1, %v465_v55  ;;  %v762_v3 = vsel %vm750_vm1, %v760_v62, %v761_v61  ;;  %v1075_v4 = vpop.f32.mrf.mxu0  ;;  %v764_v6 = vrot.slane %v731_v63, 1 }
 0x133   : > { %v1107_v5 = vpop.f32.mrf.mxu1  ;;  %778 = vrot.lane.b32.xlu1 %v762_v3, %s1373_s18 }
 0x134   : > { %v763_v7 = vrot.slane %v730_v2, 1  ;;  %v733_v8 = vadd.f32 %v1107_v5, %v1072_v59  ;;  %v485_v9 = vpop.f32.mrf.mxu0 }
 0x135   : > { %v703_v10 = vpop.f32.mrf.mxu1 }
 0x136   : > { %v732_v11 = vadd.f32 %v703_v10, %v475_v0  ;;  %v765_v12 = vsel %vm750_vm1, %v763_v7, %v764_v6  ;;  %v1078_v13 = vpop.f32.mrf.mxu0  ;;  %v767_v16 = vrot.slane %v733_v8, 1 }
 0x137   : > { %v1110_v14 = vpop.f32.mrf.mxu1  ;;  %780 = vrot.lane.b32.xlu0 %v765_v12, %s1373_s18  ;;  %v809_v15 = vadd.f32 %v1596_v23, %v1078_v13 }
 0x138   : > { %v766_v17 = vrot.slane %v732_v11, 1  ;;  %v735_v18 = vadd.f32 %v1110_v14, %v1075_v4  ;;  %v495_v19 = vpop.f32.mrf.mxu0 }
 0x139   : > { %v808_v20 = vadd.f32 %v1598_v25, %v495_v19  ;;  %v713_v21 = vpop.f32.mrf.mxu1  ;;  %v813_v26 = vrot.slane %v809_v15, 1 }
 0x13a   : > { %v734_v22 = vadd.f32 %v713_v21, %v485_v9  ;;  %v768_v24 = vsel %vm750_vm1, %v766_v17, %v767_v16  ;;  %v770_v28 = vrot.slane %v735_v18, 1 }
 0x13b   : > { %v812_v27 = vrot.slane %v808_v20, 1  ;;  %782 = vrot.lane.b32.xlu1 %v768_v24, %s1373_s18 }
 0x13c   : > { %v769_v29 = vrot.slane %v734_v22, 1 }
 0x13d   : > { %v814_v30 = vsel %vm750_vm1, %v812_v27, %v813_v26 }
 0x13e   : > { %v771_v23 = vsel %vm750_vm1, %v769_v29, %v770_v28 }
 0x13f   : > { %784 = vrot.lane.b32.xlu0 %v771_v23, %s1373_s18  ;;  %815 = vrot.lane.b32.xlu1 %v814_v30, %s1373_s18 }
 0x199   : > { %v773_v25 = vpop.permute.xlu0 %772 }
 0x19a   : > { %v793_v32 = vadd.f32 %v773_v25, %v1600_v31 }
 0x19c   : > { %801 = vst.msk [vmem:[%s279_s10] sm:$0xff] %vm800_vm2, %v793_v32 }
 0x19d   : > { %v775_v33 = vpop.permute.xlu0 %774 }
 0x19e   : > { %v794_v34 = vadd.f32 %v775_v33, %v1603_v39 }
 0x1a0   : > { %802 = vst.msk [vmem:[%s279_s10 + $0x8] sm:$0xff] %vm800_vm2, %v794_v34 }
 0x1a1   : > { %v777_v35 = vpop.permute.xlu1 %776 }
 0x1a2   : > { %v795_v36 = vadd.f32 %v777_v35, %v1608_v48 }
 0x1a4   : > { %803 = vst.msk [vmem:[%s279_s10 + $0x10] sm:$0xff] %vm800_vm2, %v795_v36 }
 0x1a5   : > { %v779_v37 = vpop.permute.xlu1 %778 }
 0x1a6   : > { %v796_v38 = vadd.f32 %v779_v37, %v728_v57 }
 0x1a8   : > { %804 = vst.msk [vmem:[%s279_s10 + $0x18] sm:$0xff] %vm800_vm2, %v796_v38 }
 0x1a9   : > { %v781_v40 = vpop.permute.xlu0 %780 }
 0x1aa   : > { %v797_v31 = vadd.f32 %v781_v40, %v730_v2 }
 0x1ac   : > { %805 = vst.msk [vmem:[%s279_s10 + $0x20] sm:$0xff] %vm800_vm2, %v797_v31 }
 0x1ad   : > { %v783_v41 = vpop.permute.xlu1 %782 }
 0x1ae   : > { %v798_v42 = vadd.f32 %v783_v41, %v732_v11 }
 0x1b0   : > { %806 = vst.msk [vmem:[%s279_s10 + $0x28] sm:$0xff] %vm800_vm2, %v798_v42 }
 0x1b1   : > { %v785_v39 = vpop.permute.xlu0 %784  ;;  %v816_v43 = vpop.permute.xlu1 %815 }
 0x1b2   : > { %v799_v44 = vadd.f32 %v785_v39, %v734_v22  ;;  %v818_v45 = vadd.f32 %v816_v43, %v808_v20 }
 0x1b4   : > { %807 = vst.msk [vmem:[%s279_s10 + $0x30] sm:$0xff] %vm800_vm2, %v799_v44  ;;  %1006 = vst.msk [vmem:[%s279_s10 + $0x38] sm:$0xff] %vm800_vm2, %v818_v45 }
 0x1b5   : > { %1291 = shalt.err (!%p1288_p6)
}
 0x1b6   : > { %s1292_s28 = scalar_lea.hbm %s1641_s7, 1024  ;;  %s1296_s2 = scalar_lea.hbm %s1696_s3, 2048 }
 0x1b7   : > { %p1293_p9 = scmp.ne.s32.totalorder %s1641_s7, %s1292_s28  ;;  %p1297_p3 = scmp.lt.s32.totalorder %s1641_s7, %s1696_s3 }
 0x1b8   : > { %p1298_p5 = scmp.lt.s32.totalorder %s1296_s2, %s1292_s28 }
 0x1b9   : > { %p1294_p12 = pnand %p1293_p9, %p1479_p0 }
 0x1ba   : > { %p1299_p1 = por %p1298_p5, %p1297_p3 }
 0x1bb   : > { %p1295_p13 = pneg %p1294_p12 }
 0x1bd   : > { %p1300_p4 = pnand %p1299_p1, %p1295_p13 }
 0x1bf   : > { %1303 = shalt.err (!%p1300_p4)
}
 0x1c0   : > { %s1375_s22 = smov 128   ;;  %s1376_s26 = smov 8  }
 0x1c1   : > { %1120 = dma.vmem_to_hbm [thread:$0]  (%p1479_p0), %s1643_s24, 1024, %s1641_s7, %s822_s15, %s1375_s22, %s1375_s22, %s1376_s26  }
 0x1c2 PF: > { %s852_s29 = sand.u32 1, %s1346_s12   ;;  %p1718_p8 = scmp.ne.s32.totalorder %s1707_s21, 0 }
 0x1c3   : > { %s853_s8 = scalar_lea.sflag [#allocation4], %s852_s29 }
 0x1c4   : > { %p1134_p11 = pnand %p964_p10, %p1718_p8 }
 0x1c6   : > { %p1135_p7 = pneg %p1134_p11 }
 0x1c8   : > { %1341 = dma.done.wait (%p1135_p7), %s853_s8, 1024  }
 0x1c9   : > { %1343 = vsyncadd (%p1135_p7), %s853_s8, 4294966272  ;;  %s22_s17 = sadd.s32 1, %s1366_s17   ;;  %s1719_s18 = sld [smem:[#allocation13_spill]] }
 0x1ca   : > { %p19_p2 = scmp.ge.s32.totalorder %s22_s17, 4   ;;  %s1720_s14 = sld [smem:[#allocation16_spill]] }
 0x1cb   : > { %s1721_s15 = sld [smem:[#allocation14_spill]]  ;;  %s1723_s12 = smov %s1350_s13 }
 0x1cc   : > { %s1722_s16 = sld [smem:[#allocation15_spill]]  ;;  %21 = sbr.rel (!%p19_p2) target bundleno = 11 (0xb), region = 96 }
 0x1cf   : > { %s1724_s13 = smov %s1719_s18 }
 0x1d1   :  { %858 = vsyncpa [#allocation3], 1 }
 0x1d2   :  { %860 = vsyncpa [#allocation3 + $0x1], 1 }
 0x1d3   :  { %861 = vsyncpa [#allocation6], 1 }
 0x1d4   :  { %863 = vsyncpa [#allocation6 + $0x1], 1 }
 0x1d5   :  { %864 = vsyncpa [#allocation4], 1 }
 0x1d6   :  { %866 = vsyncpa [#allocation4 + $0x1], 1 }

</bundles_post_ra>
